<compile_context>
chip_gen: v7x
topology: tpu7x:2x2x1
jax: 0.10.0
libtpu: 0.0.40
codegen_flags: <defaults>
</compile_context>

<pallas_src>
import jax
import jax.numpy as jnp
from jax.experimental import pallas as pl
from jax.experimental.pallas import tpu as pltpu


TILE_B = 128  # rows per grid step (sublane-aligned; lane axis = features)


# ----------------------------------------------------------------------------
# Fused, routed 2-layer MLP kernel:  out = relu(x @ W1 + b1) @ W2 + b2
# The agent (grasp vs. manipulate) is selected by the scalar-prefetch task
# index inside the weight index_maps, so the body itself is agent-agnostic.
# ----------------------------------------------------------------------------
def _routed_mlp_kernel(task_ref, x_ref, w1_ref, b1_ref, w2_ref, b2_ref, o_ref):
    del task_ref  # routing happens in the index_maps, not in the body
    x = x_ref[...]
    h = jnp.dot(x, w1_ref[...], preferred_element_type=jnp.float32)
    h = h + b1_ref[...]                      # [1, D_HID] broadcast (f32 VPU)
    h = jnp.maximum(h, 0.0)                  # ReLU
    # Deliberate: match the weight dtype for the second MXU pass (no-op in f32,
    # bf16-ready if weights are later stored in bf16 on v6e/v7x).
    out = jnp.dot(h.astype(w2_ref.dtype), w2_ref[...],
                  preferred_element_type=jnp.float32)
    out = out + b2_ref[...]                  # [1, D_OUT] broadcast
    o_ref[...] = out.astype(o_ref.dtype)     # lane-dense store (D_OUT == 128)


def combined_forward(task_idx, x, w1, b1, w2, b2):
    """Single routed pallas_call serving both agents.

    task_idx: int32[1]  -- 0 = Grasp, 1 = Manipulate (scalar prefetch).
    x:  f32[B, D_IN]               (B a multiple of TILE_B)
    w1: [2, D_IN, D_HID]   b1: [2, 1, D_HID]
    w2: [2, D_HID, D_OUT]  b2: [2, 1, D_OUT]
    """
    B, d_in = x.shape
    d_hid = w1.shape[2]
    d_out = w2.shape[2]
    assert B % TILE_B == 0, "batch must be a multiple of TILE_B"
    grid = (B // TILE_B,)

    # index_maps receive (grid_i, task_ref); task_ref is an SMEM int32[1] ref.
    x_spec = pl.BlockSpec((TILE_B, d_in), lambda i, t: (i, 0))
    w1_spec = pl.BlockSpec((None, d_in, d_hid), lambda i, t: (t[0], 0, 0))
    b1_spec = pl.BlockSpec((None, 1, d_hid), lambda i, t: (t[0], 0, 0))
    w2_spec = pl.BlockSpec((None, d_hid, d_out), lambda i, t: (t[0], 0, 0))
    b2_spec = pl.BlockSpec((None, 1, d_out), lambda i, t: (t[0], 0, 0))
    o_spec = pl.BlockSpec((TILE_B, d_out), lambda i, t: (i, 0))

    return pl.pallas_call(
        _routed_mlp_kernel,
        out_shape=jax.ShapeDtypeStruct((B, d_out), x.dtype),
        grid_spec=pltpu.PrefetchScalarGridSpec(
            num_scalar_prefetch=1,
            grid=grid,
            in_specs=[x_spec, w1_spec, b1_spec, w2_spec, b2_spec],
            out_specs=o_spec,
        ),
        compiler_params=pltpu.CompilerParams(
            # Batch tiles are independent -> v7x's two TensorCores split them.
            dimension_semantics=("parallel",),
        ),
    )(task_idx, x, w1, b1, w2, b2)


# ----------------------------------------------------------------------------
# CombinedModel: router over two identically-shaped agents + lang-embed cache
# ----------------------------------------------------------------------------
def _init_agent_params(key, d_in, d_hidden, d_out, dtype=jnp.float32):
    k1, k2, k3, k4 = jax.random.split(key, 4)
    scale1 = 1.0 / jnp.sqrt(jnp.float32(d_in))
    scale2 = 1.0 / jnp.sqrt(jnp.float32(d_hidden))
    return {
        "w1": (jax.random.normal(k1, (d_in, d_hidden)) * scale1).astype(dtype),
        "b1": (jax.random.normal(k2, (1, d_hidden)) * 0.01).astype(dtype),
        "w2": (jax.random.normal(k3, (d_hidden, d_out)) * scale2).astype(dtype),
        "b2": (jax.random.normal(k4, (1, d_out)) * 0.01).astype(dtype),
    }


class CombinedModel:
    """JAX/Pallas analogue of the PyTorch CombinedModel wrapper."""

    TASK_TO_IDX = {"Grasp": 0, "Manipulate": 1}

    def __init__(self, key, d_in=128, d_hidden=128, d_out=128,
                 lang_vocab=16, lang_dim=128, dtype=jnp.float32):
        k_grasp, k_manip, k_lang = jax.random.split(key, 3)
        gp = _init_agent_params(k_grasp, d_in, d_hidden, d_out, dtype)
        mp = _init_agent_params(k_manip, d_in, d_hidden, d_out, dtype)
        # Stack both agents on a leading axis so one kernel serves both tasks.
        self.params = {
            name: jnp.stack([gp[name], mp[name]], axis=0)
            for name in ("w1", "b1", "w2", "b2")
        }
        # InstructionEmbedding(lang_encoder) stand-in: a deterministic table,
        # returned untouched exactly as in the reference forward.
        self.lang_embed_cache = (
            jax.random.normal(k_lang, (lang_vocab, lang_dim)).astype(dtype))
        self._fwd = jax.jit(combined_forward)

    def forward(self, x, task_type):
        if task_type not in self.TASK_TO_IDX:
            raise ValueError("Unknown task type")
        task_idx = jnp.array([self.TASK_TO_IDX[task_type]], dtype=jnp.int32)
        out = self._fwd(task_idx, x,
                        self.params["w1"], self.params["b1"],
                        self.params["w2"], self.params["b2"])
        return out, self.lang_embed_cache

    __call__ = forward


# ----------------------------------------------------------------------------
# Reference (pure JAX) for correctness check
# ----------------------------------------------------------------------------
def _agent_forward_ref(x, params, idx):
    w1, b1 = params["w1"][idx], params["b1"][idx]
    w2, b2 = params["w2"][idx], params["b2"][idx]
    h = jnp.maximum(x @ w1 + b1, 0.0)
    return h @ w2 + b2


if __name__ == "__main__":
    key = jax.random.PRNGKey(0)
    k_model, k_x = jax.random.split(key)

    B, D_IN = 256, 128  # lane-dense features, 2 batch tiles of 128 rows
    model = CombinedModel(k_model, d_in=D_IN, d_hidden=128, d_out=128)

    x = jax.random.normal(k_x, (B, D_IN), dtype=jnp.float32)

    # Grasp branch
    out_g, cache_g = model(x, "Grasp")
    out_g = jax.block_until_ready(out_g)
    ref_g = _agent_forward_ref(x, model.params, 0)
    assert jnp.allclose(out_g, ref_g, atol=1e-4, rtol=1e-4), "Grasp mismatch"

    # Manipulate branch (same compiled kernel, different scalar route)
    out_m, cache_m = model(x, "Manipulate")
    out_m = jax.block_until_ready(out_m)
    ref_m = _agent_forward_ref(x, model.params, 1)
    assert jnp.allclose(out_m, ref_m, atol=1e-4, rtol=1e-4), "Manipulate mismatch"

    # Independent weights per agent -> outputs differ.
    assert not jnp.allclose(out_g, out_m), "agents unexpectedly identical"
    # Cache is returned untouched, same object for both branches.
    assert cache_g is cache_m

    # Unknown task raises, matching the reference semantics.
    try:
        model(x, "Fly")
        raise AssertionError("expected ValueError for unknown task type")
    except ValueError:
        pass

    print("KERNEL_OK")
</pallas_src>

<mosaic_0001>
module attributes {stable_mosaic.version = 11 : i64} {
  func.func @_routed_mlp_kernel(%arg0: i32, %arg1: memref<1xi32, #tpu.memory_space<smem>>, %arg2: memref<128x128xf32, #tpu.memory_space<vmem>>, %arg3: memref<1x128x128xf32, #tpu.memory_space<vmem>>, %arg4: memref<1x1x128xf32, #tpu.memory_space<vmem>>, %arg5: memref<1x128x128xf32, #tpu.memory_space<vmem>>, %arg6: memref<1x1x128xf32, #tpu.memory_space<vmem>>, %arg7: memref<128x128xf32, #tpu.memory_space<vmem>>) attributes {dimension_semantics = [#tpu.dimension_semantics<parallel>], iteration_bounds = array<i64: 2>, scalar_prefetch = 1 : i64, scratch_operands = 0 : i64, tpu.core_type = #tpu.core_type<tc>, window_params = [{transform_indices = @transform_0, window_bounds = array<i64: 128, 128>}, {transform_indices = @transform_1, window_bounds = array<i64: 1, 128, 128>}, {transform_indices = @transform_2, window_bounds = array<i64: 1, 1, 128>}, {transform_indices = @transform_3, window_bounds = array<i64: 1, 128, 128>}, {transform_indices = @transform_4, window_bounds = array<i64: 1, 1, 128>}, {transform_indices = @transform_5, window_bounds = array<i64: 128, 128>}]} {
    %c0 = arith.constant 0 : index
    %c0_0 = arith.constant 0 : index
    %0 = vector.load %arg2[%c0, %c0_0] : memref<128x128xf32, #tpu.memory_space<vmem>>, vector<128x128xf32>
    %c0_1 = arith.constant 0 : index
    %c0_2 = arith.constant 0 : index
    %c0_3 = arith.constant 0 : index
    %1 = vector.load %arg3[%c0_1, %c0_2, %c0_3] : memref<1x128x128xf32, #tpu.memory_space<vmem>>, vector<1x128x128xf32>
    %2 = vector.shape_cast %1 : vector<1x128x128xf32> to vector<128x128xf32>
    %cst = arith.constant dense<0.000000e+00> : vector<128x128xf32>
    %3 = tpu.matmul %0, %2, %cst {dimension_numbers = #tpu.dot_dimension_numbers<[1], [0], [0], [1], [0, 0, 1, 1], [], []>} : vector<128x128xf32>, vector<128x128xf32>, vector<128x128xf32> -> vector<128x128xf32>
    %c0_4 = arith.constant 0 : index
    %c0_5 = arith.constant 0 : index
    %c0_6 = arith.constant 0 : index
    %4 = vector.load %arg4[%c0_4, %c0_5, %c0_6] : memref<1x1x128xf32, #tpu.memory_space<vmem>>, vector<1x1x128xf32>
    %5 = vector.shape_cast %4 : vector<1x1x128xf32> to vector<1x128xf32>
    %6 = vector.broadcast %5 : vector<1x128xf32> to vector<128x128xf32>
    %7 = arith.addf %3, %6 : vector<128x128xf32>
    %cst_7 = arith.constant 0.000000e+00 : f32
    %8 = vector.broadcast %cst_7 : f32 to vector<128x128xf32>
    %9 = arith.maximumf %7, %8 : vector<128x128xf32>
    %c0_8 = arith.constant 0 : index
    %c0_9 = arith.constant 0 : index
    %c0_10 = arith.constant 0 : index
    %10 = vector.load %arg5[%c0_8, %c0_9, %c0_10] : memref<1x128x128xf32, #tpu.memory_space<vmem>>, vector<1x128x128xf32>
    %11 = vector.shape_cast %10 : vector<1x128x128xf32> to vector<128x128xf32>
    %cst_11 = arith.constant dense<0.000000e+00> : vector<128x128xf32>
    %12 = tpu.matmul %9, %11, %cst_11 {dimension_numbers = #tpu.dot_dimension_numbers<[1], [0], [0], [1], [0, 0, 1, 1], [], []>} : vector<128x128xf32>, vector<128x128xf32>, vector<128x128xf32> -> vector<128x128xf32>
    %c0_12 = arith.constant 0 : index
    %c0_13 = arith.constant 0 : index
    %c0_14 = arith.constant 0 : index
    %13 = vector.load %arg6[%c0_12, %c0_13, %c0_14] : memref<1x1x128xf32, #tpu.memory_space<vmem>>, vector<1x1x128xf32>
    %14 = vector.shape_cast %13 : vector<1x1x128xf32> to vector<1x128xf32>
    %15 = vector.broadcast %14 : vector<1x128xf32> to vector<128x128xf32>
    %16 = arith.addf %12, %15 : vector<128x128xf32>
    %c0_15 = arith.constant 0 : index
    %c0_16 = arith.constant 0 : index
    %17 = vector.load %arg7[%c0_15, %c0_16] : memref<128x128xf32, #tpu.memory_space<vmem>>, vector<128x128xf32>
    tpu.vector_store %arg7[%c0_15, %c0_16], %16 {strides = array<i32>} : memref<128x128xf32, #tpu.memory_space<vmem>>, vector<128x128xf32>,
    return
  }
  func.func @transform_0(%arg0: i32, %arg1: memref<1xi32, #tpu.memory_space<smem>>) -> (i32, i32) {
    %c0_i32 = arith.constant 0 : i32
    %c0_i32_0 = arith.constant 0 : i32
    return %arg0, %c0_i32 : i32, i32
  }
  func.func @transform_1(%arg0: i32, %arg1: memref<1xi32, #tpu.memory_space<smem>>) -> (i32, i32, i32) {
    %c0 = arith.constant 0 : index
    %0 = memref.load %arg1[%c0] : memref<1xi32, #tpu.memory_space<smem>>
    %c0_i32 = arith.constant 0 : i32
    %c0_i32_0 = arith.constant 0 : i32
    %c0_i32_1 = arith.constant 0 : i32
    return %0, %c0_i32, %c0_i32_0 : i32, i32, i32
  }
  func.func @transform_2(%arg0: i32, %arg1: memref<1xi32, #tpu.memory_space<smem>>) -> (i32, i32, i32) {
    %c0 = arith.constant 0 : index
    %0 = memref.load %arg1[%c0] : memref<1xi32, #tpu.memory_space<smem>>
    %c0_i32 = arith.constant 0 : i32
    %c0_i32_0 = arith.constant 0 : i32
    %c0_i32_1 = arith.constant 0 : i32
    return %0, %c0_i32, %c0_i32_0 : i32, i32, i32
  }
  func.func @transform_3(%arg0: i32, %arg1: memref<1xi32, #tpu.memory_space<smem>>) -> (i32, i32, i32) {
    %c0 = arith.constant 0 : index
    %0 = memref.load %arg1[%c0] : memref<1xi32, #tpu.memory_space<smem>>
    %c0_i32 = arith.constant 0 : i32
    %c0_i32_0 = arith.constant 0 : i32
    %c0_i32_1 = arith.constant 0 : i32
    return %0, %c0_i32, %c0_i32_0 : i32, i32, i32
  }
  func.func @transform_4(%arg0: i32, %arg1: memref<1xi32, #tpu.memory_space<smem>>) -> (i32, i32, i32) {
    %c0 = arith.constant 0 : index
    %0 = memref.load %arg1[%c0] : memref<1xi32, #tpu.memory_space<smem>>
    %c0_i32 = arith.constant 0 : i32
    %c0_i32_0 = arith.constant 0 : i32
    %c0_i32_1 = arith.constant 0 : i32
    return %0, %c0_i32, %c0_i32_0 : i32, i32, i32
  }
  func.func @transform_5(%arg0: i32, %arg1: memref<1xi32, #tpu.memory_space<smem>>) -> (i32, i32) {
    %c0_i32 = arith.constant 0 : i32
    %c0_i32_0 = arith.constant 0 : i32
    return %arg0, %c0_i32 : i32, i32
  }
}

</mosaic_0001>

<bundles_post_ra>
// kernel: combined_forward.1
= control target key start
LH: loop header
LB: loop body
LE: loop exit
PB: predicated region body
PF: predicated region fallthrough
CT: control target
= control target key end

     0   :  { %s1834_s0 = inlined_call_operand.<no memory space> [shape: s32[1], index: 0, kind: input, shape index: {}]   ;;  %s1835_s1 = inlined_call_operand.hbm [shape: f32[256,128], index: 1, kind: input, shape index: {}]   ;;  %s1836_s2 = inlined_call_operand.hbm [shape: f32[2,128,128], index: 2, kind: input, shape index: {}]   ;;  %s1837_s3 = inlined_call_operand.vmem [shape: f32[2,1,128], index: 3, kind: input, shape index: {}]   ;;  %s1838_s4 = inlined_call_operand.hbm [shape: f32[2,128,128], index: 4, kind: input, shape index: {}]   ;;  %s1839_s5 = inlined_call_operand.vmem [shape: f32[2,1,128], index: 5, kind: input, shape index: {}]   ;;  %s1840_s6 = inlined_call_operand.hbm [shape: f32[256,128], index: 6, kind: output, shape index: {}]  }
   0x1   :  { %1851 = sst [smem:[#allocation15_spill]] %s1836_s2 }
   0x2   :  { %11 = sst [smem:[#allocation3]] %s1834_s0 }
   0x3   :  { %12 = vsyncpa [#allocation5], 0 }
   0x4   :  { %14 = vsyncpa [#allocation5 + $0x1], 0 }
   0x5   :  { %15 = vsyncpa [#allocation8], 0 }
   0x6   :  { %16 = vsyncpa [#allocation6], 0 }
   0x7   :  { %18 = vsyncpa [#allocation6 + $0x1], 0  ;;  %s1487_s23 = smov 0   ;;  %s1489_s24 = smov 0  }
   0x8   :  { %s1491_s25 = smov 0   ;;  %s1493_s26 = smov 0  }
   0x9   :  { %s1495_s27 = smov 0   ;;  %s1497_s28 = smov 0  }
   0xa   :  { %s1499_s29 = smov 0   ;;  %s1501_s0 = smov 0  }
   0xb LB: > { %s1524_s30 = sadd.s32 4294967295, %s1439_s0   ;;  %s54_s7 = sld [smem:[#allocation3]]  ;;  %s1439_s0 = sphi %s1501_s0, %s1879_s0   ;;  %s1435_s29 = sphi %s1499_s29, %s1878_s29   ;;  %s1431_s28 = sphi %s1497_s28, %s1877_s28   ;;  %s1427_s27 = sphi %s1495_s27, %s1876_s27   ;;  %s1423_s26 = sphi %s1493_s26, %s1820_s26   ;;  %s1419_s25 = sphi %s1491_s25, %s1875_s25   ;;  %s1415_s24 = sphi %s1489_s24, %s1815_s24   ;;  %s1411_s23 = sphi %s1487_s23, %s1874_s23  }
   0xc   : > { %p1841_p0 = scmp.eq.s32.totalorder %s1524_s30, 0  ;;  %p72_p1 = scmp.ne.s32.totalorder %s1423_s26, %s1419_s25 }
   0xd   : > { %p128_p2 = scmp.ne.s32.totalorder %s1415_s24, %s1411_s23  ;;  %p861_p5 = scmp.ge.s32.totalorder %s1439_s0, 1 }
   0xe   : > { %p1532_p4 = por %p72_p1, %p1841_p0  ;;  %p193_p7 = scmp.lt.s32.totalorder %s1439_s0, 3 }
   0xf   : > { %p1539_p6 = por %p128_p2, %p1841_p0  ;;  %s1855_s2 = sld [smem:[#allocation15_spill]] }
  0x10   : > { %s1852_s8 = scalar_select %p1532_p4, 1, 0 }
  0x11   : > { %s1853_s9 = scalar_select %p1539_p6, 1, 0 }
  0x12   : > { %s880_s10 = sshll.u32 %s54_s7, 11  ;;  %p1544_p8 = pnand %p861_p5, %p193_p7 }
  0x13   : > { %s1441_s15 = smov [#allocation7]   ;;  %s1573_s21 = scalar_lea.hbm %s1838_s4, %s880_s10 }
  0x14   : > { %s1854_s11 = scalar_select %p1544_p8, 1, 0 }
  0x15   : > { %s1551_s14 = scalar_lea.hbm %s1855_s2, %s880_s10  ;;  %p1132_p9 = pneg %p1544_p8 }
  0x16   : > { %s209_s16 = sshll.u32 %s1441_s15, 4  ;;  %s1235_s22 = scalar_lea.hbm %s1551_s14, 2048  ;;  %s1555_s16 = int_to_ptr.vmem [resolvable:$true] %s209_s16 }
  0x17   : > { %p1559_p10 = pnand %p1132_p9, %p1532_p4  ;;  %p1565_p11 = pnand %p1132_p9, %p1539_p6 }
  0x18   : > { %p1236_p13 = scmp.ne.s32.totalorder %s1551_s14, %s1235_s22  ;;  %s1240_s7 = scalar_lea.hbm %s1855_s2, 4096 }
  0x19   : > { %s1857_s18 = scalar_select %p1565_p11, 1, 0 }
  0x1a   : > { %p1237_p1 = pneg %p1559_p10  ;;  %p1241_p7 = scmp.lt.u32.totalorder %s1551_s14, %s1855_s2 }
  0x1b   : > { %p1242_p9 = scmp.lt.u32.totalorder %s1240_s7, %s1235_s22  ;;  %p1244_p3 = scmp.lt.u32.totalorder %s1235_s22, %s1551_s14 }
  0x1c   : > { %p1238_p2 = pnand %p1237_p1, %p1236_p13 }
  0x1d   : > { %p1243_p12 = por %p1242_p9, %p1241_p7 }
  0x1e   : > { %p1239_p5 = pneg %p1238_p2 }
  0x1f   : > { %p1245_p0 = por %p1244_p3, %p1243_p12 }
  0x21   : > { %p1246_p6 = pnand %p1245_p0, %p1239_p5 }
  0x23   : > { %1249 = shalt.err (!%p1246_p6)
}
  0x24   : > { %s1250_s10 = scalar_lea.vmem %s1555_s16, 2048  ;;  %p1258_p8 = scmp.lt.s32.totalorder %s1555_s16, %s1555_s16 }
  0x25   : > { %p1251_p13 = scmp.ne.s32.totalorder %s1555_s16, %s1250_s10  ;;  %p1259_p11 = scmp.lt.s32.totalorder %s1250_s10, %s1250_s10 }
  0x27   : > { %p1253_p2 = pnand %p1251_p13, %p1237_p1  ;;  %p1260_p7 = por %p1259_p11, %p1258_p8 }
  0x29   : > { %p1254_p4 = pneg %p1253_p2 }
  0x2b   : > { %p1261_p9 = pnand %p1260_p7, %p1254_p4 }
  0x2d   : > { %1264 = shalt.err (!%p1261_p9)
}
  0x2e   : > { %s1848_s15 = smov 128   ;;  %s1849_s19 = smov 8  }
  0x2f   : > { %1135 = dma.hbm_to_vmem [thread:$0]  (!%p1559_p10), %s1551_s14, 2048, %s1555_s16, [#allocation8], %s1848_s15, %s1848_s15, %s1849_s19  }
  0x30   : > { %s1444_s20 = smov [#allocation9]   ;;  %s1265_s23 = scalar_lea.hbm %s1573_s21, 2048 }
  0x31   : > { %s234_s22 = sshll.u32 %s1444_s20, 4  ;;  %p1266_p0 = scmp.ne.s32.totalorder %s1573_s21, %s1265_s23  ;;  %s235_s22 = int_to_ptr.vmem [resolvable:$true] %s234_s22 }
  0x32   : > { %p1858_p3 = scmp.ne.s32.totalorder %s1857_s18, 0  ;;  %s1270_s12 = scalar_lea.hbm %s1838_s4, 4096 }
  0x33   : > { %p1271_p11 = scmp.lt.u32.totalorder %s1573_s21, %s1838_s4  ;;  %p1272_p10 = scmp.lt.u32.totalorder %s1270_s12, %s1265_s23 }
  0x34   : > { %p1267_p4 = pneg %p1858_p3  ;;  %p1274_p1 = scmp.lt.u32.totalorder %s1265_s23, %s1573_s21 }
  0x35   : > { %p1273_p12 = por %p1272_p10, %p1271_p11 }
  0x36   : > { %p1268_p6 = pnand %p1267_p4, %p1266_p0 }
  0x37   : > { %p1275_p5 = por %p1274_p1, %p1273_p12 }
  0x38   : > { %p1269_p8 = pneg %p1268_p6 }
  0x3a   : > { %p1276_p13 = pnand %p1275_p5, %p1269_p8 }
  0x3c   : > { %1279 = shalt.err (!%p1276_p13)
}
  0x3d   : > { %s1280_s14 = scalar_lea.vmem %s235_s22, 2048  ;;  %p1288_p0 = scmp.lt.s32.totalorder %s235_s22, %s235_s22 }
  0x3e   : > { %p1281_p2 = scmp.ne.s32.totalorder %s235_s22, %s1280_s14  ;;  %p1289_p6 = scmp.lt.s32.totalorder %s1280_s14, %s1280_s14 }
  0x40   : > { %p1283_p7 = pnand %p1281_p2, %p1267_p4  ;;  %p1290_p10 = por %p1289_p6, %p1288_p0 }
  0x42   : > { %p1284_p9 = pneg %p1283_p7 }
  0x44   : > { %p1291_p11 = pnand %p1290_p10, %p1284_p9 }
  0x46   : > { %1294 = shalt.err (!%p1291_p11)
}
  0x47   : > { %1138 = dma.hbm_to_vmem [thread:$0]  (!%p1858_p3), %s1573_s21, 2048, %s235_s22, [#allocation8], %s1848_s15, %s1848_s15, %s1849_s19  }
  0x48   : > { %s860_s16 = sadd.s32 4294967294, %s1439_s0   ;;  %s1630_s18 = sadd.s32 1, %s1439_s0  }
  0x49   : > { %s28_s10 = ssub.s32 %s1439_s0, %s1630_s18  ;;  %s31_s20 = sadd.s32 1, %s1435_s29 }
  0x4a   : > { %p29_p4 = scmp.eq.s32.totalorder %s28_s10, 0  ;;  %p38_p8 = scmp.ne.s32.totalorder %s1435_s29, %s1431_s28 }
  0x4b   : > { %p39_p12 = scmp.eq.s32.totalorder %s1439_s0, 0  ;;  %p44_p1 = scmp.ne.s32.totalorder %s1431_s28, %s1427_s27 }
  0x4c   : > { %s1641_s23 = scalar_select %p29_p4, %s1435_s29, %s31_s20  }
  0x4d   : > { %p40_p5 = por %p39_p12, %p38_p8  ;;  %p1859_p13 = scmp.eq.s32.totalorder %s1524_s30, 0 }
  0x4e   : > { %p1861_p3 = scmp.eq.s32.totalorder %s1524_s30, 1  ;;  %p186_p9 = scmp.eq.s32.totalorder %s860_s16, 1 }
  0x4f   : > { %p1645_p2 = por %p1859_p13, %p44_p1  ;;  %p1147_p0 = scmp.lt.s32.totalorder %s1439_s0, 2 }
  0x50   : > { %p1651_p7 = por %p1861_p3, %p38_p8  ;;  %s256_s22 = sand.u32 1, %s1435_s29  }
  0x51   : > { %p1657_p6 = por %p186_p9, %p44_p1  ;;  %s867_s12 = sshll.u32 %s256_s22, 7 }
  0x52   : > { %s1862_s21 = scalar_select %p1651_p7, 1, 0 }
  0x53   : > { %s1863_s7 = scalar_select %p1657_p6, 1, 0 }
  0x54   : > { %s882_s17 = sshll.u32 %s1439_s0, 11  ;;  %s260_s20 = scalar_lea.vmem [#allocation4], %s867_s12 }
  0x55   : > { %s1665_s10 = scalar_lea.hbm %s1835_s1, %s882_s17  ;;  %s267_s15 = sshll.u32 %s260_s20, 4  ;;  %s1671_s15 = int_to_ptr.vmem [resolvable:$true] %s267_s15 }
  0x56   : > { %p1667_p10 = pnand %p1147_p0, %p40_p5  ;;  %s1673_s19 = scalar_lea.sflag [#allocation5], %s256_s22 }
  0x57   : > { %s1295_s2 = scalar_lea.hbm %s1665_s10, 2048  ;;  %s1300_s13 = scalar_lea.hbm %s1835_s1, 4096 }
  0x58   : > { %p1296_p11 = scmp.ne.s32.totalorder %s1665_s10, %s1295_s2  ;;  %p1297_p4 = pneg %p1667_p10 }
  0x59   : > { %p1301_p1 = scmp.lt.u32.totalorder %s1665_s10, %s1835_s1  ;;  %p1302_p5 = scmp.lt.u32.totalorder %s1300_s13, %s1295_s2 }
  0x5a   : > { %p1298_p8 = pnand %p1297_p4, %p1296_p11  ;;  %p1304_p3 = scmp.lt.u32.totalorder %s1295_s2, %s1665_s10 }
  0x5b   : > { %p1303_p13 = por %p1302_p5, %p1301_p1 }
  0x5c   : > { %p1299_p12 = pneg %p1298_p8 }
  0x5d   : > { %p1305_p9 = por %p1304_p3, %p1303_p13 }
  0x5f   : > { %p1306_p0 = pnand %p1305_p9, %p1299_p12 }
  0x61   : > { %1309 = shalt.err (!%p1306_p0)
}
  0x62   : > { %s1310_s22 = scalar_lea.vmem %s1671_s15, 2048  ;;  %s1445_s12 = smov [#allocation4]  }
  0x63   : > { %p1311_p11 = scmp.ne.s32.totalorder %s1671_s15, %s1310_s22  ;;  %s1315_s17 = sshll.u32 %s1445_s12, 4  ;;  %s1316_s17 = int_to_ptr.vmem [resolvable:$false] %s1315_s17 }
  0x64   : > { %s1317_s14 = scalar_lea.vmem %s1316_s17, 4096  ;;  %p1318_p7 = scmp.lt.s32.totalorder %s1671_s15, %s1316_s17 }
  0x65   : > { %p1313_p8 = pnand %p1311_p11, %p1297_p4  ;;  %p1319_p1 = scmp.lt.s32.totalorder %s1317_s14, %s1310_s22 }
  0x67   : > { %p1314_p6 = pneg %p1313_p8  ;;  %p1320_p5 = por %p1319_p1, %p1318_p7 }
  0x69   : > { %p1321_p13 = pnand %p1320_p5, %p1314_p6 }
  0x6b   : > { %1324 = shalt.err (!%p1321_p13)
}
  0x6c   : > { %s1865_s2 = smov 8   ;;  %s1866_s13 = smov 128  }
  0x6d   : > { %1142 = dma.hbm_to_vmem [thread:$0]  (!%p1667_p10), %s1665_s10, 2048, %s1671_s15, %s1673_s19, %s1866_s13, %s1866_s13, %s1865_s2  }
  0x6e   : > { %p1867_p4 = scmp.ne.s32.totalorder %s1854_s11, 0 }
  0x6f   : > { %s1707_s20 = sand.u32 (!%p1867_p4), 1, %s1431_s28  }
  0x70   : > { %279 = sbr.rel (%p1867_p4) target bundleno = 637 (0x27d), region = 40  ;;  %s871_s22 = sshll.u32 (!%p1867_p4), %s1707_s20, 7 }
  0x71   : > { %s282_s12 = scalar_lea.sflag (!%p1867_p4), [#allocation5], %s1707_s20  ;;  %s1713_s16 = scalar_lea.vmem (!%p1867_p4), [#allocation4], %s871_s22 }
  0x77   : > { %1394 = dma.done.wait (%p1645_p2), %s282_s12, 2048  }
  0x78   : > { %1396 = vsyncadd (%p1645_p2), %s282_s12, 4294965248  ;;  %p1868_p7 = scmp.ne.s32.totalorder %s1852_s8, 0 }
  0x7a   : > { %1398 = dma.done.wait (%p1868_p7), [#allocation8], 2048  }
  0x7b   : > { %1400 = vsyncadd (%p1868_p7), [#allocation8], 4294965248  ;;  %p1869_p6 = scmp.ne.s32.totalorder %s1853_s9, 0 }
  0x7d   : > { %1402 = dma.done.wait (%p1869_p6), [#allocation8], 2048  }
  0x7e   : > { %1404 = vsyncadd (%p1869_p6), [#allocation8], 4294965248  ;;  %v358_v0 = vld [vmem:[#allocation7] sm:$0xff]  ;;  %v359_v1 = vld [vmem:[#allocation7 + $0x8] sm:$0xff]  ;;  %s330_s8 = sld [smem:[#allocation3]]  ;;  %s1755_s17 = scalar_lea.vmem [#allocation10], %s871_s22 }
  0x7f   : > { %v360_v2 = vld [vmem:[#allocation7 + $0x10] sm:$0xff]  ;;  %v1060_v3 = vpack.c.bf16 %v359_v1, %v358_v0  ;;  %v361_v4 = vld [vmem:[#allocation7 + $0x18] sm:$0xff]  ;;  %v362_v6 = vld [vmem:[#allocation7 + $0x20] sm:$0xff]  ;;  %s883_s14 = sshll.u32 %s1524_s30, 11  ;;  %s740_s2 = sshll.u32 %s1755_s17, 4  ;;  %s1778_s2 = int_to_ptr.vmem [resolvable:$true] %s740_s2 }
  0x80   : > { %v1064_v5 = vpack.c.bf16 %v361_v4, %v360_v2  ;;  %v363_v7 = vld [vmem:[#allocation7 + $0x28] sm:$0xff]  ;;  %v342_v9 = vld [vmem:[%s1713_s16] sm:$0xff]  ;;  %v364_v10 = vld [vmem:[#allocation7 + $0x30] sm:$0xff]  ;;  %s1776_s12 = scalar_lea.hbm %s1840_s6, %s883_s14  ;;  %s727_s30 = scalar_lea.sflag [#allocation6], %s1707_s20 }
  0x81   : > { %1061 = vmatprep.subr.bf16.mxu0 %v1060_v3  ;;  %v1068_v8 = vpack.c.bf16 %v363_v7, %v362_v6  ;;  %v365_v11 = vld [vmem:[#allocation7 + $0x38] sm:$0xff]  ;;  %980 = vmatprep.mubr.f32.mxu0 %v342_v9  ;;  %v366_v13 = vld [vmem:[#allocation7 + $0x40] sm:$0xff]  ;;  %v367_v14 = vld [vmem:[#allocation7 + $0x48] sm:$0xff]  ;;  %p1870_p12 = scmp.ne.s32.totalorder %s1862_s21, 0 }
  0x82   : > { %1063 = vmatpush3.bf16.msra.mxu0 %v1060_v3  ;;  %v1072_v12 = vpack.c.bf16 %v365_v11, %v364_v10  ;;  %v542_v15 = vld [vmem:[#allocation9] sm:$0xff]  ;;  %v543_v16 = vld [vmem:[#allocation9 + $0x8] sm:$0xff]  ;;  %v544_v17 = vld [vmem:[#allocation9 + $0x10] sm:$0xff]  ;;  %v1076_v21 = vpack.c.bf16 %v367_v14, %v366_v13 }
  0x83   : > { %1065 = vmatprep.subr.bf16.mxu0 %v1064_v5  ;;  %v545_v18 = vld [vmem:[#allocation9 + $0x18] sm:$0xff]  ;;  %v1092_v19 = vpack.c.bf16 %v543_v16, %v542_v15  ;;  %v546_v22 = vld [vmem:[#allocation9 + $0x20] sm:$0xff]  ;;  %v547_v23 = vld [vmem:[#allocation9 + $0x28] sm:$0xff] }
  0x84   : > { %v1096_v20 = vpack.c.bf16 %v545_v18, %v544_v17  ;;  %v368_v24 = vld [vmem:[#allocation7 + $0x50] sm:$0xff]  ;;  %v369_v25 = vld [vmem:[#allocation7 + $0x58] sm:$0xff]  ;;  %v1100_v26 = vpack.c.bf16 %v547_v23, %v546_v22  ;;  %v370_v30 = vld [vmem:[#allocation7 + $0x60] sm:$0xff]  ;;  %p331_p2 = scmp.lt.s32.totalorder %s330_s8, 1 }
  0x85   : > { %1093 = vmatprep.subr.bf16.mxu1 %v1092_v19  ;;  %v1080_v27 = vpack.c.bf16 %v369_v25, %v368_v24  ;;  %v548_v28 = vld [vmem:[#allocation9 + $0x30] sm:$0xff]  ;;  %v549_v29 = vld [vmem:[#allocation9 + $0x38] sm:$0xff]  ;;  %v371_v31 = vld [vmem:[#allocation7 + $0x68] sm:$0xff] }
  0x86   : > { %1067 = vmatpush3.bf16.msra.mxu0 %v1064_v5  ;;  %1095 = vmatpush3.bf16.msra.mxu1 %v1092_v19  ;;  %v1104_v32 = vpack.c.bf16 %v549_v29, %v548_v28  ;;  %v1084_v33 = vpack.c.bf16 %v371_v31, %v370_v30  ;;  %v550_v34 = vld [vmem:[#allocation9 + $0x40] sm:$0xff]  ;;  %v551_v35 = vld [vmem:[#allocation9 + $0x48] sm:$0xff]  ;;  %v372_v36 = vld [vmem:[#allocation7 + $0x70] sm:$0xff]  ;;  %s1881_s8 = smov (!%p331_p2, %s330_s8), 1 }
  0x87   : > { %1069 = vmatprep.subr.bf16.mxu0 %v1068_v8  ;;  %1097 = vmatprep.subr.bf16.mxu1 %v1096_v20  ;;  %v373_v37 = vld [vmem:[#allocation7 + $0x78] sm:$0xff]  ;;  %v1108_v38 = vpack.c.bf16 %v551_v35, %v550_v34  ;;  %v552_v40 = vld [vmem:[#allocation9 + $0x50] sm:$0xff]  ;;  %v554_v43 = vld [vmem:[#allocation9 + $0x60] sm:$0xff]  ;;  %s333_s15 = scalar_lea.vmem %s1837_s3, %s1881_s8  ;;  %s339_s10 = scalar_lea.vmem %s1839_s5, %s1881_s8 }
  0x88   : > { %v1088_v39 = vpack.c.bf16 %v373_v37, %v372_v36  ;;  %v553_v41 = vld [vmem:[#allocation9 + $0x58] sm:$0xff]  ;;  %v555_v44 = vld [vmem:[#allocation9 + $0x68] sm:$0xff]  ;;  %v344_v47 = vld [vmem:[%s1713_s16 + $0x10] sm:$0xff]  ;;  %s1446_s8 = smov [#allocation10]  }
  0x89   : > { %v1112_v42 = vpack.c.bf16 %v553_v41, %v552_v40  ;;  %v343_v45 = vld [vmem:[%s1713_s16 + $0x8] sm:$0xff]  ;;  %v1116_v46 = vpack.c.bf16 %v555_v44, %v554_v43  ;;  %v345_v48 = vld [vmem:[%s1713_s16 + $0x18] sm:$0xff]  ;;  %v346_v49 = vld [vmem:[%s1713_s16 + $0x20] sm:$0xff]  ;;  %s1329_s9 = sshll.u32 %s1446_s8, 4  ;;  %s1330_s9 = int_to_ptr.vmem [resolvable:$false] %s1329_s9 }
  0x8a   : > { %1071 = vmatpush3.bf16.msra.mxu0 %v1068_v8  ;;  %1099 = vmatpush3.bf16.msra.mxu1 %v1096_v20  ;;  %v347_v50 = vld [vmem:[%s1713_s16 + $0x28] sm:$0xff]  ;;  %v348_v51 = vld [vmem:[%s1713_s16 + $0x30] sm:$0xff]  ;;  %v349_v52 = vld [vmem:[%s1713_s16 + $0x38] sm:$0xff]  ;;  %s1331_s11 = scalar_lea.vmem %s1330_s9, 4096  ;;  %p1332_p0 = scmp.lt.s32.totalorder %s1778_s2, %s1330_s9 }
  0x8b   : > { %1073 = vmatprep.subr.bf16.mxu0 %v1072_v12  ;;  %1101 = vmatprep.subr.bf16.mxu1 %v1100_v26  ;;  %v350_v53 = vld [vmem:[%s1713_s16 + $0x40] sm:$0xff]  ;;  %v351_v54 = vld [vmem:[%s1713_s16 + $0x48] sm:$0xff]  ;;  %v352_v55 = vld [vmem:[%s1713_s16 + $0x50] sm:$0xff] }
  0x8c   : > { %v353_v56 = vld [vmem:[%s1713_s16 + $0x58] sm:$0xff]  ;;  %v354_v57 = vld [vmem:[%s1713_s16 + $0x60] sm:$0xff]  ;;  %v355_v58 = vld [vmem:[%s1713_s16 + $0x68] sm:$0xff] }
  0x8d   : > { %v356_v59 = vld [vmem:[%s1713_s16 + $0x70] sm:$0xff]  ;;  %v357_v60 = vld [vmem:[%s1713_s16 + $0x78] sm:$0xff]  ;;  %v873_v0 = vld [vmem:[%s333_s15] ss:$0 sm:$0xff]  ;;  %s1325_s16 = scalar_lea.vmem %s1778_s2, 2048 }
  0x8e   : > { %1075 = vmatpush3.bf16.msra.mxu0 %v1072_v12  ;;  %1103 = vmatpush3.bf16.msra.mxu1 %v1100_v26  ;;  %v556_v61 = vld [vmem:[#allocation9 + $0x70] sm:$0xff]  ;;  %v557_v62 = vld [vmem:[#allocation9 + $0x78] sm:$0xff]  ;;  %p1326_p10 = scmp.ne.s32.totalorder %s1778_s2, %s1325_s16  ;;  %p1333_p11 = scmp.lt.s32.totalorder %s1331_s11, %s1325_s16 }
  0x8f   : > { %1077 = vmatprep.subr.bf16.mxu0 %v1076_v21  ;;  %1105 = vmatprep.subr.bf16.mxu1 %v1104_v32  ;;  %v1120_v63 = vpack.c.bf16 %v557_v62, %v556_v61 }
  0x90   : > { %p1327_p3 = pnand %p1326_p10, %p1870_p12  ;;  %p1334_p8 = por %p1333_p11, %p1332_p0 }
  0x92   : > { %1079 = vmatpush3.bf16.msra.mxu0 %v1076_v21  ;;  %1107 = vmatpush3.bf16.msra.mxu1 %v1104_v32  ;;  %p1328_p9 = pneg %p1327_p3 }
  0x93   : > { %1081 = vmatprep.subr.bf16.mxu0 %v1080_v27  ;;  %1109 = vmatprep.subr.bf16.mxu1 %v1108_v38 }
  0x94   : > { %p1335_p1 = pnand %p1334_p8, %p1328_p9 }
  0x96   : > { %1083 = vmatpush3.bf16.msra.mxu0 %v1080_v27  ;;  %1111 = vmatpush3.bf16.msra.mxu1 %v1108_v38 }
  0x97   : > { %1085 = vmatprep.subr.bf16.mxu0 %v1084_v33  ;;  %1113 = vmatprep.subr.bf16.mxu1 %v1112_v42 }
  0x9a   : > { %1087 = vmatpush3.bf16.msra.mxu0 %v1084_v33  ;;  %1115 = vmatpush3.bf16.msra.mxu1 %v1112_v42 }
  0x9b   : > { %1089 = vmatprep.subr.bf16.mxu0 %v1088_v39  ;;  %1117 = vmatprep.subr.bf16.mxu1 %v1116_v46 }
  0x9e   : > { %1091 = vmatpush3.bf16.msra.mxu0 %v1088_v39  ;;  %1119 = vmatpush3.bf16.msra.mxu1 %v1116_v46 }
  0x9f   : > { %1121 = vmatprep.subr.bf16.mxu1 %v1120_v63 }
  0xa1   : > { %981 = vmatmul.mubr.f32.vlgmr.msra.gmra.mrb[0].mxu0 %v343_v45 }
  0xa2   : > { %983 = vmatprep.mubr.f32.mxu0 %v344_v47  ;;  %1123 = vmatpush3.bf16.msra.mxu1 %v1120_v63 }
  0xa5   : > { %984 = vmatmul.mubr.f32.gmra.mrb[2].mxu0 %v345_v48 }
  0xa6   : > { %986 = vmatprep.mubr.f32.mxu0 %v346_v49  ;;  %v874_v49 = vld [vmem:[%s339_s10] ss:$0 sm:$0xff] }
  0xa9   : > { %987 = vmatmul.mubr.f32.gmra.mrb[4].mxu0 %v347_v50 }
  0xaa   : > { %989 = vmatprep.mubr.f32.mxu0 %v348_v51 }
  0xad   : > { %990 = vmatmul.mubr.f32.gmra.mrb[6].mxu0 %v349_v52 }
  0xae   : > { %992 = vmatprep.mubr.f32.mxu0 %v350_v53 }
  0xb1   : > { %993 = vmatmul.mubr.f32.gmra.mrb[8].mxu0 %v351_v54 }
  0xb2   : > { %995 = vmatprep.mubr.f32.mxu0 %v352_v55 }
  0xb5   : > { %996 = vmatmul.mubr.f32.gmra.mrb[10].mxu0 %v353_v56 }
  0xb6   : > { %998 = vmatprep.mubr.f32.mxu0 %v354_v57 }
  0xb9   : > { %999 = vmatmul.mubr.f32.gmra.mrb[12].mxu0 %v355_v58 }
  0xba   : > { %1001 = vmatprep.mubr.f32.mxu0 %v356_v59 }
  0xbd   : > { %1002 = vmatmul.mubr.f32.gmra.mrb[14].mxu0 %v357_v60 }
 0x174   : > { %v982_v1 = vpop.f32.mrb[0].mxu0 }
 0x175   : > { %v453_v2 = vadd.f32 %v982_v1, %v873_v0  ;;  %v447_v3 = vpop.f32.mrb[1].mxu0 }
 0x176   : > { %v448_v4 = vadd.f32 %v873_v0, %v447_v3 }
 0x177   : > { %v527_v7 = vmax.f32 %v453_v2, 0.0 }
 0x178   : > { %v985_v5 = vpop.f32.mrb[2].mxu0  ;;  %v526_v6 = vmax.f32 %v448_v4, 0.0 }
 0x179   : > { %v463_v8 = vadd.f32 %v985_v5, %v873_v0  ;;  %v457_v9 = vpop.f32.mrb[3].mxu0 }
 0x17a   : > { %v458_v10 = vadd.f32 %v873_v0, %v457_v9  ;;  %1036 = vmatprep.mubr.f32.mxu1 %v526_v6 }
 0x17b   : > { %1037 = vmatmul.mubr.f32.vlgmr.msra.gmra.mrb[0].mxu1 %v527_v7  ;;  %v529_v13 = vmax.f32 %v463_v8, 0.0 }
 0x17c   : > { %v528_v11 = vmax.f32 %v458_v10, 0.0  ;;  %v988_v12 = vpop.f32.mrb[4].mxu0 }
 0x17d   : > { %v473_v14 = vadd.f32 %v988_v12, %v873_v0  ;;  %v467_v15 = vpop.f32.mrb[5].mxu0 }
 0x17e   : > { %v468_v16 = vadd.f32 %v873_v0, %v467_v15  ;;  %1039 = vmatprep.mubr.f32.mxu1 %v528_v11 }
 0x17f   : > { %1040 = vmatmul.mubr.f32.gmra.mrb[2].mxu1 %v529_v13  ;;  %v531_v19 = vmax.f32 %v473_v14, 0.0 }
 0x180   : > { %v530_v17 = vmax.f32 %v468_v16, 0.0  ;;  %v991_v18 = vpop.f32.mrb[6].mxu0 }
 0x181   : > { %v483_v20 = vadd.f32 %v991_v18, %v873_v0  ;;  %v477_v21 = vpop.f32.mrb[7].mxu0 }
 0x182   : > { %v478_v22 = vadd.f32 %v873_v0, %v477_v21  ;;  %1042 = vmatprep.mubr.f32.mxu1 %v530_v17 }
 0x183   : > { %1043 = vmatmul.mubr.f32.gmra.mrb[4].mxu1 %v531_v19  ;;  %v533_v25 = vmax.f32 %v483_v20, 0.0 }
 0x184   : > { %v532_v23 = vmax.f32 %v478_v22, 0.0  ;;  %v994_v24 = vpop.f32.mrb[8].mxu0 }
 0x185   : > { %v493_v26 = vadd.f32 %v994_v24, %v873_v0  ;;  %v487_v27 = vpop.f32.mrb[9].mxu0 }
 0x186   : > { %v488_v28 = vadd.f32 %v873_v0, %v487_v27  ;;  %1045 = vmatprep.mubr.f32.mxu1 %v532_v23 }
 0x187   : > { %1046 = vmatmul.mubr.f32.gmra.mrb[6].mxu1 %v533_v25  ;;  %v535_v31 = vmax.f32 %v493_v26, 0.0 }
 0x188   : > { %v534_v29 = vmax.f32 %v488_v28, 0.0  ;;  %v997_v30 = vpop.f32.mrb[10].mxu0 }
 0x189   : > { %v503_v32 = vadd.f32 %v997_v30, %v873_v0  ;;  %v497_v33 = vpop.f32.mrb[11].mxu0 }
 0x18a   : > { %v498_v34 = vadd.f32 %v873_v0, %v497_v33  ;;  %1048 = vmatprep.mubr.f32.mxu1 %v534_v29 }
 0x18b   : > { %1049 = vmatmul.mubr.f32.gmra.mrb[8].mxu1 %v535_v31  ;;  %v537_v37 = vmax.f32 %v503_v32, 0.0 }
 0x18c   : > { %v536_v35 = vmax.f32 %v498_v34, 0.0  ;;  %v1000_v36 = vpop.f32.mrb[12].mxu0 }
 0x18d   : > { %v513_v38 = vadd.f32 %v1000_v36, %v873_v0  ;;  %v507_v39 = vpop.f32.mrb[13].mxu0 }
 0x18e   : > { %v508_v40 = vadd.f32 %v873_v0, %v507_v39  ;;  %1051 = vmatprep.mubr.f32.mxu1 %v536_v35 }
 0x18f   : > { %1052 = vmatmul.mubr.f32.gmra.mrb[10].mxu1 %v537_v37  ;;  %v539_v43 = vmax.f32 %v513_v38, 0.0 }
 0x190   : > { %v538_v41 = vmax.f32 %v508_v40, 0.0  ;;  %v1003_v42 = vpop.f32.mrb[14].mxu0 }
 0x191   : > { %v523_v44 = vadd.f32 %v1003_v42, %v873_v0  ;;  %v517_v45 = vpop.f32.mrb[15].mxu0 }
 0x192   : > { %v518_v46 = vadd.f32 %v873_v0, %v517_v45  ;;  %1054 = vmatprep.mubr.f32.mxu1 %v538_v41 }
 0x193   : > { %1055 = vmatmul.mubr.f32.gmra.mrb[12].mxu1 %v539_v43  ;;  %v541_v48 = vmax.f32 %v523_v44, 0.0 }
 0x194   : > { %v540_v47 = vmax.f32 %v518_v46, 0.0 }
 0x196   : > { %1057 = vmatprep.mubr.f32.mxu1 %v540_v47 }
 0x197   : > { %1058 = vmatmul.mubr.f32.gmra.mrb[14].mxu1 %v541_v48 }
 0x24e   : > { %v1038_v50 = vpop.f32.mrb[0].mxu1 }
 0x24f   : > { %v637_v51 = vadd.f32 %v1038_v50, %v874_v49  ;;  %v631_v52 = vpop.f32.mrb[1].mxu1 }
 0x250   : > { %v632_v53 = vadd.f32 %v874_v49, %v631_v52 }
 0x251   : > { %711 = vst [vmem:[%s1755_s17 + $0x8] sm:$0xff] %v637_v51 }
 0x252   : > { %710 = vst [vmem:[%s1755_s17] sm:$0xff] %v632_v53  ;;  %v1041_v54 = vpop.f32.mrb[2].mxu1 }
 0x253   : > { %v647_v55 = vadd.f32 %v1041_v54, %v874_v49  ;;  %v641_v56 = vpop.f32.mrb[3].mxu1 }
 0x254   : > { %v642_v57 = vadd.f32 %v874_v49, %v641_v56 }
 0x255   : > { %713 = vst [vmem:[%s1755_s17 + $0x18] sm:$0xff] %v647_v55 }
 0x256   : > { %712 = vst [vmem:[%s1755_s17 + $0x10] sm:$0xff] %v642_v57  ;;  %v1044_v58 = vpop.f32.mrb[4].mxu1 }
 0x257   : > { %v657_v59 = vadd.f32 %v1044_v58, %v874_v49  ;;  %v651_v60 = vpop.f32.mrb[5].mxu1 }
 0x258   : > { %v652_v61 = vadd.f32 %v874_v49, %v651_v60 }
 0x259   : > { %715 = vst [vmem:[%s1755_s17 + $0x28] sm:$0xff] %v657_v59 }
 0x25a   : > { %714 = vst [vmem:[%s1755_s17 + $0x20] sm:$0xff] %v652_v61  ;;  %v1047_v62 = vpop.f32.mrb[6].mxu1 }
 0x25b   : > { %v667_v63 = vadd.f32 %v1047_v62, %v874_v49  ;;  %v661_v0 = vpop.f32.mrb[7].mxu1 }
 0x25c   : > { %v662_v1 = vadd.f32 %v874_v49, %v661_v0 }
 0x25d   : > { %717 = vst [vmem:[%s1755_s17 + $0x38] sm:$0xff] %v667_v63 }
 0x25e   : > { %716 = vst [vmem:[%s1755_s17 + $0x30] sm:$0xff] %v662_v1  ;;  %v1050_v2 = vpop.f32.mrb[8].mxu1 }
 0x25f   : > { %v677_v3 = vadd.f32 %v1050_v2, %v874_v49  ;;  %v671_v4 = vpop.f32.mrb[9].mxu1 }
 0x260   : > { %v672_v5 = vadd.f32 %v874_v49, %v671_v4 }
 0x261   : > { %719 = vst [vmem:[%s1755_s17 + $0x48] sm:$0xff] %v677_v3 }
 0x262   : > { %718 = vst [vmem:[%s1755_s17 + $0x40] sm:$0xff] %v672_v5  ;;  %v1053_v6 = vpop.f32.mrb[10].mxu1 }
 0x263   : > { %v687_v7 = vadd.f32 %v1053_v6, %v874_v49  ;;  %v681_v8 = vpop.f32.mrb[11].mxu1 }
 0x264   : > { %v682_v9 = vadd.f32 %v874_v49, %v681_v8 }
 0x265   : > { %721 = vst [vmem:[%s1755_s17 + $0x58] sm:$0xff] %v687_v7 }
 0x266   : > { %720 = vst [vmem:[%s1755_s17 + $0x50] sm:$0xff] %v682_v9  ;;  %v1056_v10 = vpop.f32.mrb[12].mxu1 }
 0x267   : > { %v697_v11 = vadd.f32 %v1056_v10, %v874_v49  ;;  %v691_v12 = vpop.f32.mrb[13].mxu1 }
 0x268   : > { %v692_v13 = vadd.f32 %v874_v49, %v691_v12 }
 0x269   : > { %723 = vst [vmem:[%s1755_s17 + $0x68] sm:$0xff] %v697_v11 }
 0x26a   : > { %722 = vst [vmem:[%s1755_s17 + $0x60] sm:$0xff] %v692_v13  ;;  %v1059_v14 = vpop.f32.mrb[14].mxu1 }
 0x26b   : > { %v707_v15 = vadd.f32 %v1059_v14, %v874_v49  ;;  %v701_v16 = vpop.f32.mrb[15].mxu1 }
 0x26c   : > { %v702_v17 = vadd.f32 %v874_v49, %v701_v16 }
 0x26d   : > { %725 = vst [vmem:[%s1755_s17 + $0x78] sm:$0xff] %v707_v15 }
 0x26e   : > { %724 = vst [vmem:[%s1755_s17 + $0x70] sm:$0xff] %v702_v17 }
 0x26f   : > { %1338 = shalt.err (!%p1335_p1)
}
 0x270   : > { %s1339_s15 = scalar_lea.hbm %s1776_s12, 2048  ;;  %s1343_s10 = scalar_lea.hbm %s1840_s6, 4096 }
 0x271   : > { %p1340_p5 = scmp.ne.s32.totalorder %s1776_s12, %s1339_s15  ;;  %p1344_p7 = scmp.lt.u32.totalorder %s1776_s12, %s1840_s6 }
 0x272   : > { %p1345_p6 = scmp.lt.u32.totalorder %s1343_s10, %s1339_s15  ;;  %p1347_p10 = scmp.lt.u32.totalorder %s1339_s15, %s1776_s12 }
 0x273   : > { %p1341_p13 = pnand %p1340_p5, %p1870_p12 }
 0x274   : > { %p1346_p2 = por %p1345_p6, %p1344_p7 }
 0x275   : > { %p1342_p4 = pneg %p1341_p13 }
 0x276   : > { %p1348_p3 = por %p1347_p10, %p1346_p2 }
 0x278   : > { %p1349_p9 = pnand %p1348_p3, %p1342_p4 }
 0x27a   : > { %1352 = shalt.err (!%p1349_p9)
}
 0x27b   : > { %s1447_s13 = smov 128   ;;  %s1448_s22 = smov 8  }
 0x27c   : > { %1130 = dma.vmem_to_hbm [thread:$0]  (%p1870_p12), %s1778_s2, 2048, %s1776_s12, %s727_s30, %s1447_s13, %s1447_s13, %s1448_s22  }
 0x27d PF: > { %s755_s16 = sand.u32 1, %s1427_s27   ;;  %p1871_p0 = scmp.ne.s32.totalorder %s1863_s7, 0 }
 0x27e   : > { %p1872_p11 = scmp.ge.s32.totalorder %s1439_s0, 2  ;;  %s756_s8 = scalar_lea.sflag [#allocation6], %s755_s16 }
 0x280   : > { %p1144_p8 = pnand %p1872_p11, %p1871_p0 }
 0x282   : > { %1406 = dma.done.wait (!%p1144_p8), %s756_s8, 2048  }
 0x283   : > { %1408 = vsyncadd (!%p1144_p8), %s756_s8, 4294965248  ;;  %s1873_s9 = smov %s1641_s23  ;;  %p21_p1 = scmp.ge.s32.totalorder %s1630_s18, 4  }
 0x284   : > { %s1874_s23 = smov %s1415_s24  ;;  %s1815_s24 = smov 0  }
 0x285   : > { %s1875_s25 = smov %s1423_s26  ;;  %s1820_s26 = smov 0  }
 0x286   : > { %s1876_s27 = smov %s1431_s28  ;;  %s1877_s28 = smov %s1435_s29 }
 0x287   : > { %s1878_s29 = smov %s1873_s9  ;;  %s1879_s0 = smov %s1630_s18 }
 0x288   :  { %23 = sbr.rel (!%p21_p1) target bundleno = 11 (0xb), region = 101 }
 0x28f   :  { %761 = vsyncpa [#allocation5], 1 }
 0x290   :  { %763 = vsyncpa [#allocation5 + $0x1], 1 }
 0x291   :  { %764 = vsyncpa [#allocation8], 1 }
 0x292   :  { %765 = vsyncpa [#allocation6], 1 }
 0x293   :  { %767 = vsyncpa [#allocation6 + $0x1], 1 }

</bundles_post_ra>
